<compile_context>
chip_gen: v7x
topology: tpu7x:2x2x1
jax: 0.10.0
libtpu: 0.0.40
codegen_flags: <defaults>
</compile_context>

<pallas_src>
import functools

import jax
import jax.numpy as jnp
from jax.experimental import pallas as pl
from jax.experimental.pallas import tpu as pltpu

EPS = 1e-5


def _vmem_limit_bytes():
    # Chip-aware: leave ~25% headroom for compiler scratch / double-buffers.
    try:
        cap = pltpu.get_tpu_info().vmem_capacity_bytes
        return int(cap * 3 // 4)
    except Exception:
        return 48 * 1024 * 1024


VMEM_LIMIT = _vmem_limit_bytes()


def _round_up(x, q):
    return ((x + q - 1) // q) * q


def _largest_tile(dim, pref, quantum):
    """Largest divisor of dim that is <= pref and a multiple of quantum,
    falling back to the full dimension (always a legal full-extent block)."""
    if dim <= pref:
        return dim
    t = (pref // quantum) * quantum
    while t >= quantum:
        if dim % t == 0:
            return t
        t -= quantum
    return dim


def _const_spec(block_shape, index_map):
    """BlockSpec for a constant-index block: single-buffer it."""
    try:
        return pl.BlockSpec(block_shape, index_map, pipeline_mode=pl.Buffered(1))
    except TypeError:  # pipeline_mode not supported by this BlockSpec signature
        return pl.BlockSpec(block_shape, index_map)


# ----------------------------------------------------------------------------
# Tiled matmul + bias (patch embedding)
# ----------------------------------------------------------------------------
def _matmul_bias_kernel(x_ref, w_ref, b_ref, o_ref, acc_ref):
    @pl.when(pl.program_id(2) == 0)
    def _():
        acc_ref[...] = jnp.zeros_like(acc_ref)

    acc_ref[...] += jnp.dot(x_ref[...], w_ref[...],
                            preferred_element_type=jnp.float32)

    @pl.when(pl.program_id(2) == pl.num_programs(2) - 1)
    def _():
        o_ref[...] = (acc_ref[...] + b_ref[...]).astype(o_ref.dtype)


def matmul_bias(x, w, b):
    """x: (M, K) bf16, w: (K, N) bf16, b: (1, N) f32 -> (M, N) f32."""
    m, k = x.shape
    k2, n = w.shape
    assert k == k2
    # Pad M so the 256-row MXU (v6e/v7x) is fully occupied; harmless on v5e.
    tm = 256 if m >= 256 else _round_up(m, 8)
    m_pad = _round_up(m, tm)
    if m_pad != m:
        x = jnp.pad(x, ((0, m_pad - m), (0, 0)))
    tn = _largest_tile(n, 512, 128)
    tk = _largest_tile(k, 512, 128)
    grid = (m_pad // tm, n // tn, k // tk)
    flops = 2 * m_pad * n * k
    bytes_accessed = int(m_pad * k * x.dtype.itemsize + w.size * w.dtype.itemsize
                         + m_pad * n * 4 + n * 4)
    out = pl.pallas_call(
        _matmul_bias_kernel,
        out_shape=jax.ShapeDtypeStruct((m_pad, n), jnp.float32),
        grid=grid,
        in_specs=[
            pl.BlockSpec((tm, tk), lambda i, j, kk: (i, kk)),
            pl.BlockSpec((tk, tn), lambda i, j, kk: (kk, j)),
            pl.BlockSpec((1, tn), lambda i, j, kk: (0, j)),
        ],
        out_specs=pl.BlockSpec((tm, tn), lambda i, j, kk: (i, j)),
        scratch_shapes=[pltpu.VMEM((tm, tn), jnp.float32)],
        compiler_params=pltpu.CompilerParams(
            dimension_semantics=("parallel", "parallel", "arbitrary"),
            vmem_limit_bytes=VMEM_LIMIT),
        cost_estimate=pl.CostEstimate(flops=flops, transcendentals=0,
                                      bytes_accessed=bytes_accessed),
    )(x, w, b.reshape(1, n))
    return out[:m]


# ----------------------------------------------------------------------------
# Fused transformer stack (all layers in one pallas_call, grid = (B, L))
# ----------------------------------------------------------------------------
def _layernorm(h, w, b):
    # EVA02 LayerNorm: scale is (1 + weight), unbiased=False variance, fp32.
    mu = jnp.mean(h, axis=-1, keepdims=True)
    var = jnp.mean((h - mu) ** 2, axis=-1, keepdims=True)
    hn = (h - mu) * jax.lax.rsqrt(var + EPS)
    return hn * (1.0 + w) + b


def _stack_kernel(x_ref,
                  ln1w_ref, ln1b_ref, wqkv_ref, bqkv_ref,
                  wproj_ref, bproj_ref, ln2w_ref, ln2b_ref,
                  wfc1_ref, bfc1_ref, wfc2_ref, bfc2_ref,
                  cos_ref, sin_e_ref, sin_o_ref,
                  o_ref, *, num_heads, head_dim):
    """One EVA02 transformer layer; residual stream is the VMEM-resident
    output block, carried across the layer grid axis."""
    @pl.when(pl.program_id(1) == 0)
    def _():
        o_ref[0] = x_ref[0]

    x = o_ref[0]                                           # (N, D) fp32
    n_tok, dim = x.shape
    hd = head_dim
    scale = hd ** -0.5

    # --- attention branch ---
    h = _layernorm(x, ln1w_ref[0], ln1b_ref[0])
    qkv = jnp.dot(h.astype(jnp.bfloat16), wqkv_ref[0],
                  preferred_element_type=jnp.float32) + bqkv_ref[0]
    q = qkv[:, 0:dim] * scale                              # fold attn scale
    k = qkv[:, dim:2 * dim]
    v = qkv[:, 2 * dim:3 * dim].astype(jnp.bfloat16)

    cos = cos_ref[...]
    sin_e = sin_e_ref[...]
    sin_o = sin_o_ref[...]

    def rope(t):
        # Interleaved rotate_half with signs folded into the host-built
        # sin_even / sin_odd tables; the wrap-around lanes of each roll land
        # where the corresponding sin table is zero (and the cls row has
        # cos=1, sin=0, so it is left unchanged).
        return (t * cos
                + pltpu.roll(t, shift=dim - 1, axis=1) * sin_e   # t[j+1]
                + pltpu.roll(t, shift=1, axis=1) * sin_o)        # t[j-1]

    q = rope(q).astype(jnp.bfloat16)
    k = rope(k).astype(jnp.bfloat16)

    # Batched-head attention: (H, N, hd) operands, 3-D einsums, then ONE
    # lane-dense (N, D) result (no per-head masked stores into scratch).
    q3 = jnp.stack([q[:, i * hd:(i + 1) * hd] for i in range(num_heads)], 0)
    k3 = jnp.stack([k[:, i * hd:(i + 1) * hd] for i in range(num_heads)], 0)
    v3 = jnp.stack([v[:, i * hd:(i + 1) * hd] for i in range(num_heads)], 0)

    s = jnp.einsum('hnd,hmd->hnm', q3, k3,
                   preferred_element_type=jnp.float32)     # (H, N, N)
    s = s - jnp.max(s, axis=-1, keepdims=True)
    e = jnp.exp(s)
    p = e * pl.reciprocal(jnp.sum(e, axis=-1, keepdims=True), approx=True)
    pv = jnp.einsum('hnm,hmd->hnd', p.astype(jnp.bfloat16), v3,
                    preferred_element_type=jnp.float32)    # (H, N, hd)
    attn = jnp.concatenate([pv[i] for i in range(num_heads)], axis=-1)  # (N, D)
    attn = jnp.dot(attn.astype(jnp.bfloat16), wproj_ref[0],
                   preferred_element_type=jnp.float32) + bproj_ref[0]
    x = x + attn

    # --- SwiGLU MLP branch ---
    h2 = _layernorm(x, ln2w_ref[0], ln2b_ref[0])
    g = jnp.dot(h2.astype(jnp.bfloat16), wfc1_ref[0],
                preferred_element_type=jnp.float32) + bfc1_ref[0]
    mh = g.shape[-1] // 2
    g1 = g[:, :mh]
    g2 = g[:, mh:]
    m = (g1 * jax.nn.sigmoid(g1)) * g2                     # silu(x1) * x2
    m = jnp.dot(m.astype(jnp.bfloat16), wfc2_ref[0],
                preferred_element_type=jnp.float32) + bfc2_ref[0]
    o_ref[0] = (x + m).astype(o_ref.dtype)


_WEIGHT_NAMES = ['ln1w', 'ln1b', 'wqkv', 'bqkv', 'wproj', 'bproj',
                 'ln2w', 'ln2b', 'wfc1', 'bfc1', 'wfc2', 'bfc2']


def transformer_stack(x, stacked, cos, sin_e, sin_o, num_heads, head_dim):
    B, N, D = x.shape
    L = stacked['wqkv'].shape[0]
    Mh = stacked['wfc2'].shape[1]
    kern = functools.partial(_stack_kernel, num_heads=num_heads, head_dim=head_dim)

    weights = [stacked[nm] for nm in _WEIGHT_NAMES]

    def wspec(a):
        nd = a.ndim
        blk = (1,) + a.shape[1:]
        return pl.BlockSpec(blk, lambda b, l: (l,) + (0,) * (nd - 1))

    tbl_spec = _const_spec((N, D), lambda b, l: (0, 0))
    in_specs = ([pl.BlockSpec((1, N, D), lambda b, l: (b, 0, 0))]
                + [wspec(a) for a in weights]
                + [tbl_spec, tbl_spec, tbl_spec])

    flops_layer = (2 * N * D * 3 * D          # qkv
                   + 2 * N * N * D * 2        # scores + pv
                   + 2 * N * D * D            # proj
                   + 2 * N * D * 2 * Mh       # fc1
                   + 2 * N * Mh * D)          # fc2
    transc_layer = num_heads * N * N + N * Mh
    bytes_w = sum(int(a.size * a.dtype.itemsize) for a in weights)
    bytes_accessed = int(2 * B * N * D * 4 + B * bytes_w + 3 * N * D * 4)

    return pl.pallas_call(
        kern,
        out_shape=jax.ShapeDtypeStruct((B, N, D), jnp.float32),
        grid=(B, L),
        in_specs=in_specs,
        out_specs=pl.BlockSpec((1, N, D), lambda b, l: (b, 0, 0)),
        compiler_params=pltpu.CompilerParams(
            dimension_semantics=("parallel", "arbitrary"),   # megacore over batch
            vmem_limit_bytes=VMEM_LIMIT),
        cost_estimate=pl.CostEstimate(flops=int(B * L * flops_layer),
                                      transcendentals=int(B * L * transc_layer),
                                      bytes_accessed=bytes_accessed),
    )(x, *weights, cos, sin_e, sin_o)


# ----------------------------------------------------------------------------
# Final pooling + LayerNorm + head (batch-tiled)
# ----------------------------------------------------------------------------
def _pool_head_kernel(x_ref, lnw_ref, lnb_ref, wh_ref, bh_ref, o_ref, *, num_extra):
    x = x_ref[...]                                          # (Bt, N, D) fp32
    n_tok = x.shape[1]
    total = jnp.sum(x, axis=1)                              # (Bt, D)
    extra = jnp.sum(x[:, :num_extra, :], axis=1)            # prefix slice (offset 0)
    pooled = (total - extra) * (1.0 / (n_tok - num_extra))
    y = _layernorm(pooled, lnw_ref[...], lnb_ref[...])
    logits = jnp.dot(y.astype(jnp.bfloat16), wh_ref[...],
                     preferred_element_type=jnp.float32) + bh_ref[...]
    o_ref[...] = logits.astype(o_ref.dtype)


def pool_norm_head(x, lnw, lnb, wh, bh, num_extra):
    B, N, D = x.shape
    C = wh.shape[1]
    bt = max(d for d in range(1, min(B, 8) + 1) if B % d == 0)
    kern = functools.partial(_pool_head_kernel, num_extra=num_extra)
    return pl.pallas_call(
        kern,
        out_shape=jax.ShapeDtypeStruct((B, C), jnp.float32),
        grid=(B // bt,),
        in_specs=[
            pl.BlockSpec((bt, N, D), lambda i: (i, 0, 0)),
            _const_spec((1, D), lambda i: (0, 0)),
            _const_spec((1, D), lambda i: (0, 0)),
            _const_spec((D, C), lambda i: (0, 0)),
            _const_spec((1, C), lambda i: (0, 0)),
        ],
        out_specs=pl.BlockSpec((bt, C), lambda i: (i, 0)),
        compiler_params=pltpu.CompilerParams(
            dimension_semantics=("parallel",),
            vmem_limit_bytes=VMEM_LIMIT),
    )(x, lnw, lnb, wh, bh)


# ----------------------------------------------------------------------------
# Parameters / RoPE tables (deterministic, synthetic)
# ----------------------------------------------------------------------------
def rope_tables(head_dim, num_heads, num_extra, theta=10000.0):
    # torch module hardcodes image_size=224, patch_size=16 -> seq_len = 196.
    seq_len = (224 // 16) ** 2
    D = head_dim * num_heads
    exp = jnp.arange(0, head_dim, 2, dtype=jnp.float32) / (-head_dim)
    inv = theta ** exp                                      # (hd/2,)
    t = jnp.arange(seq_len, dtype=jnp.float32)
    fr = jnp.outer(t, inv)                                  # (seq, hd/2)
    fr = jnp.concatenate([fr, fr], axis=1)                  # torch repeat(1, 2)
    cos = jnp.tile(jnp.cos(fr), (1, num_heads))             # (seq, D)
    sin = jnp.tile(jnp.sin(fr), (1, num_heads))
    # extend with identity rows for the extra (cls) tokens
    cos_ext = jnp.concatenate([jnp.ones((num_extra, D), jnp.float32), cos], 0)
    sin_ext = jnp.concatenate([jnp.zeros((num_extra, D), jnp.float32), sin], 0)
    # sign-masked tables: even lanes take -sin * t[j+1], odd lanes +sin * t[j-1]
    even = (jnp.arange(D) % 2 == 0)[None, :]
    sin_e = jnp.where(even, -sin_ext, 0.0)
    sin_o = jnp.where(even, 0.0, sin_ext)
    return cos_ext, sin_ext, sin_e, sin_o


def init_params(key, cfg):
    D = cfg['embed_dim']
    Mh = cfg['mlp_dim']
    p = cfg['patch_size']
    num_patches = (cfg['image_size'] // p) ** 2
    N = num_patches + cfg['num_extra']
    bf = jnp.bfloat16

    ks = jax.random.split(key, 8 + cfg['num_layers'])

    def rnd(k, shape, dtype=jnp.float32, s=0.02):
        return (jax.random.normal(k, shape, jnp.float32) * s).astype(dtype)

    params = {
        'w_pe': rnd(ks[0], (3 * p * p, D), bf),    # conv weight flattened (c,u,v) x D
        'b_pe': rnd(ks[1], (1, D)),
        'cls': rnd(ks[2], (1, 1, D)),
        'pos_embed': rnd(ks[3], (1, N, D)),
        'ln_f_w': rnd(ks[4], (1, D)),
        'ln_f_b': rnd(ks[5], (1, D)),
        'w_head': rnd(ks[6], (D, cfg['num_classes']), bf),
        'b_head': rnd(ks[7], (1, cfg['num_classes'])),
    }
    blocks = []
    for i in range(cfg['num_layers']):
        bk = jax.random.split(ks[8 + i], 12)
        blocks.append(dict(
            ln1w=rnd(bk[0], (1, D)), ln1b=rnd(bk[1], (1, D)),
            wqkv=rnd(bk[2], (D, 3 * D), bf), bqkv=rnd(bk[3], (1, 3 * D)),
            wproj=rnd(bk[4], (D, D), bf), bproj=rnd(bk[5], (1, D)),
            ln2w=rnd(bk[6], (1, D)), ln2b=rnd(bk[7], (1, D)),
            wfc1=rnd(bk[8], (D, 2 * Mh), bf), bfc1=rnd(bk[9], (1, 2 * Mh)),
            wfc2=rnd(bk[10], (Mh, D), bf), bfc2=rnd(bk[11], (1, D)),
        ))
    params['blocks'] = blocks
    params['stacked'] = {k: jnp.stack([blk[k] for blk in blocks], axis=0)
                         for k in _WEIGHT_NAMES}
    cos_ext, sin_ext, sin_e, sin_o = rope_tables(
        cfg['head_dim'], cfg['num_heads'], cfg['num_extra'])
    params['cos'] = cos_ext
    params['sin'] = sin_ext      # plain table (reference path)
    params['sin_e'] = sin_e      # sign-masked even table (kernel)
    params['sin_o'] = sin_o      # sign-masked odd table (kernel)
    return params


# ----------------------------------------------------------------------------
# Forward (Pallas) and pure-JAX reference
# ----------------------------------------------------------------------------
def im2col(x_img, p):
    B, C, H, W = x_img.shape
    gh, gw = H // p, W // p
    patches = x_img.reshape(B, C, gh, p, gw, p).transpose(0, 2, 4, 1, 3, 5)
    return patches.reshape(B, gh * gw, C * p * p)


def eva02_forward(x_img, params, cfg):
    B = x_img.shape[0]
    p = cfg['patch_size']
    D = cfg['embed_dim']
    patches = im2col(x_img, p).astype(jnp.bfloat16)
    n_patch = patches.shape[1]
    tok = matmul_bias(patches.reshape(B * n_patch, -1), params['w_pe'], params['b_pe'])
    tok = tok.reshape(B, n_patch, D)
    cls = jnp.broadcast_to(params['cls'], (B, 1, D))
    x = jnp.concatenate([cls, tok], axis=1) + params['pos_embed']   # fp32 residual
    x = transformer_stack(x, params['stacked'], params['cos'],
                          params['sin_e'], params['sin_o'],
                          cfg['num_heads'], cfg['head_dim'])
    return pool_norm_head(x, params['ln_f_w'], params['ln_f_b'],
                          params['w_head'], params['b_head'], cfg['num_extra'])


def reference_forward(x_img, params, cfg):
    hp = jax.lax.Precision.HIGHEST
    B = x_img.shape[0]
    p = cfg['patch_size']
    D = cfg['embed_dim']
    H_heads, hd, ne = cfg['num_heads'], cfg['head_dim'], cfg['num_extra']

    def ln(h, w, b):
        mu = h.mean(-1, keepdims=True)
        var = ((h - mu) ** 2).mean(-1, keepdims=True)
        return (h - mu) / jnp.sqrt(var + EPS) * (1.0 + w) + b

    def rotate_half(t):
        tt = t.reshape(t.shape[:-1] + (-1, 2))
        t1, t2 = tt[..., 0], tt[..., 1]
        return jnp.stack([-t2, t1], axis=-1).reshape(t.shape)

    patches = im2col(x_img, p)
    tok = jnp.einsum('bnk,kd->bnd', patches, params['w_pe'], precision=hp) + params['b_pe']
    cls = jnp.broadcast_to(params['cls'], (B, 1, D))
    x = jnp.concatenate([cls, tok], axis=1) + params['pos_embed']

    cos = params['cos'][ne:, :hd]
    sin = params['sin'][ne:, :hd]

    for lp in params['blocks']:
        h = ln(x, lp['ln1w'], lp['ln1b'])
        qkv = jnp.einsum('bnd,de->bne', h, lp['wqkv'], precision=hp) + lp['bqkv']
        qkv = qkv.reshape(B, -1, 3, H_heads, hd).transpose(2, 0, 3, 1, 4)
        q, k, v = qkv[0], qkv[1], qkv[2]                    # (B, H, N, hd)

        def rope(t):
            t_seq = t[:, :, ne:]
            t_seq = t_seq * cos + rotate_half(t_seq) * sin
            return jnp.concatenate([t[:, :, :ne], t_seq], axis=2)

        q, k = rope(q), rope(k)
        attn = jnp.einsum('bhnd,bhmd->bhnm', q, k, precision=hp) * (hd ** -0.5)
        attn = jax.nn.softmax(attn, axis=-1)
        o = jnp.einsum('bhnm,bhmd->bhnd', attn, v, precision=hp)
        o = o.transpose(0, 2, 1, 3).reshape(B, -1, D)
        o = jnp.einsum('bnd,de->bne', o, lp['wproj'], precision=hp) + lp['bproj']
        x = x + o
        h2 = ln(x, lp['ln2w'], lp['ln2b'])
        g = jnp.einsum('bnd,de->bne', h2, lp['wfc1'], precision=hp) + lp['bfc1']
        g1, g2 = jnp.split(g, 2, axis=-1)
        m = (g1 * jax.nn.sigmoid(g1)) * g2
        m = jnp.einsum('bnm,md->bnd', m, lp['wfc2'], precision=hp) + lp['bfc2']
        x = x + m

    pooled = x[:, ne:].mean(axis=1)
    y = ln(pooled, params['ln_f_w'], params['ln_f_b'])
    return jnp.einsum('bd,dc->bc', y, params['w_head'], precision=hp) + params['b_head']


# ----------------------------------------------------------------------------
if __name__ == "__main__":
    # Small config.  The torch Attention hardcodes RoPE for 224/16 (196
    # patches), so image_size/patch_size are chosen to give 14x14 = 196
    # patches.  D=128 keeps the lane axis fully dense.
    cfg = dict(image_size=56, patch_size=4, embed_dim=128, mlp_dim=256,
               num_heads=4, num_layers=2, num_classes=16, num_extra=1)
    cfg['head_dim'] = cfg['embed_dim'] // cfg['num_heads']

    key = jax.random.PRNGKey(0)
    k_img, k_par = jax.random.split(key)
    B = 2
    x_img = jax.random.normal(k_img, (B, 3, cfg['image_size'], cfg['image_size']), jnp.float32)
    params = init_params(k_par, cfg)

    logits = jax.block_until_ready(eva02_forward(x_img, params, cfg))
    ref = jax.block_until_ready(reference_forward(x_img, params, cfg))

    assert logits.shape == (B, cfg['num_classes'])
    max_err = float(jnp.max(jnp.abs(logits - ref)))
    # Tolerance widened vs pure-fp32 because matmuls run with bf16 operands
    # (fp32 accumulation) and softmax uses the approximate EUP reciprocal.
    assert bool(jnp.allclose(logits, ref, rtol=2e-2, atol=2e-2)), max_err
    print("KERNEL_OK")
</pallas_src>

<mosaic_0001>
module attributes {stable_mosaic.version = 11 : i64} {
  func.func @_matmul_bias_kernel(%arg0: i32, %arg1: i32, %arg2: i32, %arg3: memref<256x48xbf16, #tpu.memory_space<vmem>>, %arg4: memref<48x128xbf16, #tpu.memory_space<vmem>>, %arg5: memref<1x128xf32, #tpu.memory_space<vmem>>, %arg6: memref<256x128xf32, #tpu.memory_space<vmem>>, %arg7: memref<256x128xf32, #tpu.memory_space<vmem>>) attributes {dimension_semantics = [#tpu.dimension_semantics<parallel>, #tpu.dimension_semantics<parallel>, #tpu.dimension_semantics<arbitrary>], iteration_bounds = array<i64: 2, 1, 1>, scalar_prefetch = 0 : i64, scratch_operands = 1 : i64, tpu.core_type = #tpu.core_type<tc>, window_params = [{transform_indices = @transform_0, window_bounds = array<i64: 256, 48>}, {transform_indices = @transform_1, window_bounds = array<i64: 48, 128>}, {transform_indices = @transform_2, window_bounds = array<i64: 1, 128>}, {transform_indices = @transform_3, window_bounds = array<i64: 256, 128>}]} {
    %c0_i32 = arith.constant 0 : i32
    %0 = arith.cmpi eq, %arg2, %c0_i32 : i32
    %1 = arith.extui %0 : i1 to i32
    %c0_i32_0 = arith.constant 0 : i32
    %2 = arith.cmpi ne, %1, %c0_i32_0 : i32
    scf.if %2 {
      %cst_10 = arith.constant 0.000000e+00 : f32
      %12 = vector.broadcast %cst_10 : f32 to vector<256x128xf32>
      %c0_11 = arith.constant 0 : index
      %c0_12 = arith.constant 0 : index
      %13 = vector.load %arg7[%c0_11, %c0_12] : memref<256x128xf32, #tpu.memory_space<vmem>>, vector<256x128xf32>
      tpu.vector_store %arg7[%c0_11, %c0_12], %12 {strides = array<i32>} : memref<256x128xf32, #tpu.memory_space<vmem>>, vector<256x128xf32>,
    } else {
    }
    %c0 = arith.constant 0 : index
    %c0_1 = arith.constant 0 : index
    %3 = vector.load %arg7[%c0, %c0_1] : memref<256x128xf32, #tpu.memory_space<vmem>>, vector<256x128xf32>
    %c0_2 = arith.constant 0 : index
    %c0_3 = arith.constant 0 : index
    %4 = vector.load %arg3[%c0_2, %c0_3] : memref<256x48xbf16, #tpu.memory_space<vmem>>, vector<256x48xbf16>
    %c0_4 = arith.constant 0 : index
    %c0_5 = arith.constant 0 : index
    %5 = vector.load %arg4[%c0_4, %c0_5] : memref<48x128xbf16, #tpu.memory_space<vmem>>, vector<48x128xbf16>
    %cst = arith.constant dense<0.000000e+00> : vector<256x128xf32>
    %6 = tpu.matmul %4, %5, %cst {dimension_numbers = #tpu.dot_dimension_numbers<[1], [0], [0], [1], [0, 0, 1, 1], [], []>} : vector<256x48xbf16>, vector<48x128xbf16>, vector<256x128xf32> -> vector<256x128xf32>
    %7 = arith.addf %3, %6 : vector<256x128xf32>
    %c0_6 = arith.constant 0 : index
    %c0_7 = arith.constant 0 : index
    %8 = vector.load %arg7[%c0_6, %c0_7] : memref<256x128xf32, #tpu.memory_space<vmem>>, vector<256x128xf32>
    tpu.vector_store %arg7[%c0_6, %c0_7], %7 {strides = array<i32>} : memref<256x128xf32, #tpu.memory_space<vmem>>, vector<256x128xf32>,
    %c0_i32_8 = arith.constant 0 : i32
    %9 = arith.cmpi eq, %arg2, %c0_i32_8 : i32
    %10 = arith.extui %9 : i1 to i32
    %c0_i32_9 = arith.constant 0 : i32
    %11 = arith.cmpi ne, %10, %c0_i32_9 : i32
    scf.if %11 {
      %c0_10 = arith.constant 0 : index
      %c0_11 = arith.constant 0 : index
      %12 = vector.load %arg7[%c0_10, %c0_11] : memref<256x128xf32, #tpu.memory_space<vmem>>, vector<256x128xf32>
      %c0_12 = arith.constant 0 : index
      %c0_13 = arith.constant 0 : index
      %13 = vector.load %arg5[%c0_12, %c0_13] : memref<1x128xf32, #tpu.memory_space<vmem>>, vector<1x128xf32>
      %14 = vector.broadcast %13 : vector<1x128xf32> to vector<256x128xf32>
      %15 = arith.addf %12, %14 : vector<256x128xf32>
      %c0_14 = arith.constant 0 : index
      %c0_15 = arith.constant 0 : index
      %16 = vector.load %arg6[%c0_14, %c0_15] : memref<256x128xf32, #tpu.memory_space<vmem>>, vector<256x128xf32>
      tpu.vector_store %arg6[%c0_14, %c0_15], %15 {strides = array<i32>} : memref<256x128xf32, #tpu.memory_space<vmem>>, vector<256x128xf32>,
    } else {
    }
    return
  }
  func.func @transform_0(%arg0: i32, %arg1: i32, %arg2: i32) -> (i32, i32) {
    %c0_i32 = arith.constant 0 : i32
    return %arg0, %arg2 : i32, i32
  }
  func.func @transform_1(%arg0: i32, %arg1: i32, %arg2: i32) -> (i32, i32) {
    %c0_i32 = arith.constant 0 : i32
    return %arg2, %arg1 : i32, i32
  }
  func.func @transform_2(%arg0: i32, %arg1: i32, %arg2: i32) -> (i32, i32) {
    %c0_i32 = arith.constant 0 : i32
    %c0_i32_0 = arith.constant 0 : i32
    return %c0_i32, %arg1 : i32, i32
  }
  func.func @transform_3(%arg0: i32, %arg1: i32, %arg2: i32) -> (i32, i32) {
    %c0_i32 = arith.constant 0 : i32
    return %arg0, %arg1 : i32, i32
  }
}

</mosaic_0001>

<bundles_post_ra>
// kernel: tpu_custom_call.1
= control target key start
LH: loop header
LB: loop body
LE: loop exit
PB: predicated region body
PF: predicated region fallthrough
CT: control target
= control target key end

     0   :  { %8 = vsyncpa [#allocation4], 0  ;;  %s1486_s0 = inlined_call_operand.vmem [shape: bf16[512,48], index: 0, kind: input, shape index: {}]   ;;  %s1487_s1 = inlined_call_operand.vmem [shape: bf16[48,128], index: 1, kind: input, shape index: {}]   ;;  %s1488_s2 = inlined_call_operand.vmem [shape: f32[1,128], index: 2, kind: input, shape index: {}]   ;;  %s1489_s3 = inlined_call_operand.hbm [shape: f32[512,128], index: 3, kind: output, shape index: {}]  }
   0x1   :  { %10 = vsyncpa [#allocation4 + $0x1], 0  ;;  %s1253_s12 = smov 0   ;;  %s1255_s13 = smov 0  }
   0x2   :  { %s1257_s14 = smov 0   ;;  %s1259_s15 = smov 0  }
   0x3   :  { %s1261_s16 = smov 0   ;;  %s1263_s17 = smov 0  }
   0x4 LB: > { %s959_s18 = sadd.s32 4294967295, %s1228_s17   ;;  %s960_s19 = sadd.s32 4294967294, %s1228_s17   ;;  %s1228_s17 = sphi %s1263_s17, %s16_s17   ;;  %s1224_s16 = sphi %s1261_s16, %s1496_s16   ;;  %s1220_s15 = sphi %s1259_s15, %s1495_s15   ;;  %s1216_s14 = sphi %s1257_s14, %s1494_s14   ;;  %s1212_s13 = sphi %s1255_s13, %s1493_s13   ;;  %s1208_s12 = sphi %s1253_s12, %s1492_s12  }
   0x5   : > { %s35_s20 = sadd.s32 1, %s1224_s16  ;;  %s126_s21 = sadd.s32 1, %s1216_s14 }
   0x6   : > { %p37_p0 = scmp.ge.s32.totalorder %s35_s20, 2  ;;  %p136_p1 = scmp.ne.s32.totalorder %s1216_s14, %s1212_s13 }
   0x7   : > { %p137_p2 = scmp.eq.s32.totalorder %s959_s18, 1  ;;  %p142_p3 = scmp.ne.s32.totalorder %s1212_s13, %s1208_s12 }
   0x8   : > { %s1498_s20 = smov (%p37_p0, %s35_s20), 0  ;;  %p143_p5 = scmp.eq.s32.totalorder %s960_s19, 1 }
   0x9   : > { %p1293_p4 = por %p137_p2, %p136_p1  ;;  %s121_s23 = ssub.s32 %s1224_s16, %s1498_s20 }
   0xa   : > { %p965_p6 = scmp.ge.s32.totalorder %s1228_s17, 1  ;;  %p124_p7 = scmp.eq.s32.totalorder %s121_s23, 0 }
   0xb   : > { %p1300_p8 = por %p143_p5, %p142_p3  ;;  %p191_p9 = scmp.lt.s32.totalorder %s1228_s17, 3 }
   0xc   : > { %s1306_s25 = scalar_select %p124_p7, %s1216_s14, %s126_s21  }
   0xd   : > { %p192_p10 = pnand %p965_p6, %p191_p9 }
   0xe   : > { %v1131_v0 = vld [vmem:[%s1487_s1] sm:$0xff] (!%p192_p10)   ;;  %s967_s28 = sshll.u32 (!%p192_p10), %s1220_s15, 5  ;;  %v1132_v1 = vld [vmem:[%s1487_s1 + $0x8] sm:$0xff] (!%p192_p10)   ;;  %v1133_v2 = vld [vmem:[%s1487_s1 + $0x10] sm:$0xff] (!%p192_p10)   ;;  %vm456_vm0 = vcmask (!%p192_p10), 392192   ;;  %s226_s10 = sand.u32 (!%p192_p10), 1, %s1212_s13  }
   0xf   : > { %195 = sbr.rel (%p192_p10) target bundleno = 284 (0x11c), region = 32  ;;  %p230_p11 = scmp.lt.s32.totalorder (!%p192_p10), %s967_s28, 63  ;;  %1030 = vmatprep.subr.bf16.mxu0 (!%p192_p10), %v1131_v0  ;;  %1068 = vmatprep.subr.bf16.mxu1 (!%p192_p10), %v1131_v0  ;;  %v1361_v19 = vld [vmem:[%s1488_s2] ss:$0 sm:$0xff] (!%p192_p10) }
  0x10   : > { %1031 = vmatpush3.bf16.msra.mxu0 (!%p192_p10), %v1131_v0  ;;  %1071 = vmatpush3.bf16.msra.mxu1 (!%p192_p10), %v1131_v0  ;;  %s966_s11 = sshll.u32 (!%p192_p10), %s226_s10, 8  ;;  %s1010_s23 = sshll.u32 (!%p192_p10), %s1220_s15, 12 }
  0x11   : > { %1032 = vmatprep.subr.bf16.mxu0 (!%p192_p10), %v1132_v1  ;;  %1069 = vmatprep.subr.bf16.mxu1 (!%p192_p10), %v1132_v1  ;;  %s1367_s21 = scalar_lea.vmem (!%p192_p10), [#allocation3], %s966_s11  ;;  %s1440_s29 = scalar_lea.sflag (!%p192_p10), [#allocation4], %s226_s10 }
  0x12   : > { %s851_s26 = sshll.u32 (!%p192_p10), %s1367_s21, 4  ;;  %s1230_s4 = smov (!%p192_p10), [#allocation3]   ;;  %s1428_s26 = int_to_ptr.vmem [resolvable:$true] %s851_s26 }
  0x13   : > { %s1150_s30 = scalar_lea.vmem (!%p192_p10), %s1428_s26, 4096  ;;  %s1154_s5 = sshll.u32 (!%p192_p10), %s1230_s4, 4  ;;  %s1155_s5 = int_to_ptr.vmem [resolvable:$false] %s1154_s5 }
  0x14   : > { %1033 = vmatpush3.bf16.msra.mxu0 (!%p192_p10), %v1132_v1  ;;  %1072 = vmatpush3.bf16.msra.mxu1 (!%p192_p10), %v1132_v1  ;;  %p1151_p12 = scmp.ne.s32.totalorder (!%p192_p10), %s1428_s26, %s1150_s30  ;;  %p1157_p1 = scmp.lt.s32.totalorder (!%p192_p10), %s1428_s26, %s1155_s5 }
  0x15   : > { %1034 = vmatprep.subr.bf16.mxu0 (!%p192_p10), %v1133_v2  ;;  %1070 = vmatprep.subr.bf16.mxu1 (!%p192_p10), %v1133_v2 }
  0x16   : > { %s1500_s28 = smov (!%p230_p11, %s967_s28), 63  ;;  %p1152_p13 = pnand %p1151_p12, %p1293_p4 }
  0x17   : > { %s968_s6 = sshll.u32 %s1500_s28, 2  ;;  %s1426_s28 = scalar_lea.hbm %s1489_s3, %s1010_s23 }
  0x18   : > { %s1321_s9 = scalar_lea.vmem %s1486_s0, %s968_s6  ;;  %1035 = vmatpush3.bf16.msra.mxu0 %v1133_v2  ;;  %1073 = vmatpush3.bf16.msra.mxu1 %v1133_v2  ;;  %p1153_p0 = pneg %p1152_p13 }
  0x19   : > { %v1134_v3 = vld [vmem:[%s1321_s9] sm:$0xff]   ;;  %v1136_v5 = vld [vmem:[%s1321_s9 + $0x8] sm:$0xff]   ;;  %v1138_v7 = vld [vmem:[%s1321_s9 + $0x10] sm:$0xff]   ;;  %s1156_s6 = scalar_lea.vmem %s1155_s5, 8192 }
  0x1a   : > { %v1135_v4 = vld [vmem:[%s1321_s9 + $0x40] sm:$0xff]   ;;  %1036 = vmatprep.mubr.msk.bf16.mxu0 %vm456_vm0, %v1134_v3  ;;  %v1137_v6 = vld [vmem:[%s1321_s9 + $0x48] sm:$0xff]   ;;  %v1139_v8 = vld [vmem:[%s1321_s9 + $0x50] sm:$0xff]   ;;  %p1158_p2 = scmp.lt.s32.totalorder %s1156_s6, %s1150_s30 }
  0x1b   : > { %1052 = vmatprep.mubr.msk.bf16.mxu1 %vm456_vm0, %v1135_v4  ;;  %1037 = vmatmul.mubr.msk.bf16.vlgmr.msra.gmra.mrb[0].mxu0 %vm456_vm0, %v1136_v5  ;;  %v1140_v9 = vld [vmem:[%s1321_s9 + $0x18] sm:$0xff]   ;;  %v1142_v11 = vld [vmem:[%s1321_s9 + $0x20] sm:$0xff]   ;;  %v1144_v13 = vld [vmem:[%s1321_s9 + $0x28] sm:$0xff]  }
  0x1c   : > { %1053 = vmatmul.mubr.msk.bf16.vlgmr.msra.gmra.mrb[0].mxu1 %vm456_vm0, %v1137_v6  ;;  %1040 = vmatprep.mubr.msk.bf16.mxu0 %vm456_vm0, %v1138_v7  ;;  %v1141_v10 = vld [vmem:[%s1321_s9 + $0x58] sm:$0xff]   ;;  %v1143_v12 = vld [vmem:[%s1321_s9 + $0x60] sm:$0xff]   ;;  %v1145_v14 = vld [vmem:[%s1321_s9 + $0x68] sm:$0xff]   ;;  %p1159_p3 = por %p1158_p2, %p1157_p1 }
  0x1d   : > { %1056 = vmatprep.mubr.msk.bf16.mxu1 %vm456_vm0, %v1139_v8  ;;  %v1146_v15 = vld [vmem:[%s1321_s9 + $0x30] sm:$0xff]   ;;  %v1148_v17 = vld [vmem:[%s1321_s9 + $0x38] sm:$0xff]  }
  0x1e   : > { %v1147_v16 = vld [vmem:[%s1321_s9 + $0x70] sm:$0xff]   ;;  %v1149_v18 = vld [vmem:[%s1321_s9 + $0x78] sm:$0xff]   ;;  %p1160_p5 = pnand %p1159_p3, %p1153_p0 }
  0x23   : > { %1041 = vmatmul.mubr.msk.bf16.gmra.mrb[4].mxu0 %vm456_vm0, %v1140_v9 }
  0x24   : > { %1057 = vmatmul.mubr.msk.bf16.gmra.mrb[4].mxu1 %vm456_vm0, %v1141_v10  ;;  %1044 = vmatprep.mubr.msk.bf16.mxu0 %vm456_vm0, %v1142_v11 }
  0x25   : > { %1060 = vmatprep.mubr.msk.bf16.mxu1 %vm456_vm0, %v1143_v12 }
  0x2b   : > { %1045 = vmatmul.mubr.msk.bf16.gmra.mrb[8].mxu0 %vm456_vm0, %v1144_v13 }
  0x2c   : > { %1061 = vmatmul.mubr.msk.bf16.gmra.mrb[8].mxu1 %vm456_vm0, %v1145_v14  ;;  %1048 = vmatprep.mubr.msk.bf16.mxu0 %vm456_vm0, %v1146_v15 }
  0x2d   : > { %1064 = vmatprep.mubr.msk.bf16.mxu1 %vm456_vm0, %v1147_v16 }
  0x33   : > { %1049 = vmatmul.mubr.msk.bf16.gmra.mrb[12].mxu0 %vm456_vm0, %v1148_v17 }
  0x34   : > { %1065 = vmatmul.mubr.msk.bf16.gmra.mrb[12].mxu1 %vm456_vm0, %v1149_v18 }
  0xee   : > { %v1038_v20 = vpop.f32.mrb[0].mxu0 }
  0xef   : > { %v1054_v21 = vpop.f32.mrb[0].mxu1  ;;  %v774_v22 = vadd.f32 %v1038_v20, %v1361_v19  ;;  %v539_v24 = vpop.f32.mrb[1].mxu0 }
  0xf0   : > { %v790_v23 = vadd.f32 %v1054_v21, %v1361_v19  ;;  %v603_v25 = vpop.f32.mrb[1].mxu1  ;;  %v772_v26 = vadd.f32 %v1361_v19, %v539_v24  ;;  %v1039_v28 = vpop.f32.mrb[2].mxu0 }
  0xf1   : > { %v788_v27 = vadd.f32 %v1361_v19, %v603_v25  ;;  %v1055_v29 = vpop.f32.mrb[2].mxu1  ;;  %806 = vst [vmem:[%s1367_s21 + $0x10] sm:$0xff] %v774_v22  ;;  %v775_v30 = vadd.f32 %v1039_v28, %v1361_v19  ;;  %v542_v32 = vpop.f32.mrb[3].mxu0 }
  0xf2   : > { %822 = vst [vmem:[%s1367_s21 + $0x90] sm:$0xff] %v790_v23  ;;  %v791_v31 = vadd.f32 %v1055_v29, %v1361_v19  ;;  %v606_v33 = vpop.f32.mrb[3].mxu1  ;;  %804 = vst [vmem:[%s1367_s21] sm:$0xff] %v772_v26  ;;  %v773_v34 = vadd.f32 %v1361_v19, %v542_v32 }
  0xf3   : > { %820 = vst [vmem:[%s1367_s21 + $0x80] sm:$0xff] %v788_v27  ;;  %v789_v35 = vadd.f32 %v1361_v19, %v606_v33  ;;  %807 = vst [vmem:[%s1367_s21 + $0x18] sm:$0xff] %v775_v30 }
  0xf4   : > { %823 = vst [vmem:[%s1367_s21 + $0x98] sm:$0xff] %v791_v31  ;;  %805 = vst [vmem:[%s1367_s21 + $0x8] sm:$0xff] %v773_v34 }
  0xf5   : > { %821 = vst [vmem:[%s1367_s21 + $0x88] sm:$0xff] %v789_v35 }
  0xf6   : > { %v1042_v36 = vpop.f32.mrb[4].mxu0 }
  0xf7   : > { %v1058_v37 = vpop.f32.mrb[4].mxu1  ;;  %v778_v38 = vadd.f32 %v1042_v36, %v1361_v19  ;;  %v555_v40 = vpop.f32.mrb[5].mxu0 }
  0xf8   : > { %v794_v39 = vadd.f32 %v1058_v37, %v1361_v19  ;;  %v619_v41 = vpop.f32.mrb[5].mxu1  ;;  %v776_v42 = vadd.f32 %v1361_v19, %v555_v40  ;;  %v1043_v44 = vpop.f32.mrb[6].mxu0 }
  0xf9   : > { %v792_v43 = vadd.f32 %v1361_v19, %v619_v41  ;;  %v1059_v45 = vpop.f32.mrb[6].mxu1  ;;  %810 = vst [vmem:[%s1367_s21 + $0x30] sm:$0xff] %v778_v38  ;;  %v779_v46 = vadd.f32 %v1043_v44, %v1361_v19  ;;  %v558_v48 = vpop.f32.mrb[7].mxu0 }
  0xfa   : > { %826 = vst [vmem:[%s1367_s21 + $0xb0] sm:$0xff] %v794_v39  ;;  %v795_v47 = vadd.f32 %v1059_v45, %v1361_v19  ;;  %v622_v49 = vpop.f32.mrb[7].mxu1  ;;  %808 = vst [vmem:[%s1367_s21 + $0x20] sm:$0xff] %v776_v42  ;;  %v777_v50 = vadd.f32 %v1361_v19, %v558_v48 }
  0xfb   : > { %824 = vst [vmem:[%s1367_s21 + $0xa0] sm:$0xff] %v792_v43  ;;  %v793_v51 = vadd.f32 %v1361_v19, %v622_v49  ;;  %811 = vst [vmem:[%s1367_s21 + $0x38] sm:$0xff] %v779_v46 }
  0xfc   : > { %827 = vst [vmem:[%s1367_s21 + $0xb8] sm:$0xff] %v795_v47  ;;  %809 = vst [vmem:[%s1367_s21 + $0x28] sm:$0xff] %v777_v50 }
  0xfd   : > { %825 = vst [vmem:[%s1367_s21 + $0xa8] sm:$0xff] %v793_v51 }
  0xfe   : > { %v1046_v52 = vpop.f32.mrb[8].mxu0 }
  0xff   : > { %v1062_v53 = vpop.f32.mrb[8].mxu1  ;;  %v782_v54 = vadd.f32 %v1046_v52, %v1361_v19  ;;  %v571_v56 = vpop.f32.mrb[9].mxu0 }
 0x100   : > { %v798_v55 = vadd.f32 %v1062_v53, %v1361_v19  ;;  %v635_v57 = vpop.f32.mrb[9].mxu1  ;;  %v780_v58 = vadd.f32 %v1361_v19, %v571_v56  ;;  %v1047_v60 = vpop.f32.mrb[10].mxu0 }
 0x101   : > { %v796_v59 = vadd.f32 %v1361_v19, %v635_v57  ;;  %v1063_v61 = vpop.f32.mrb[10].mxu1  ;;  %814 = vst [vmem:[%s1367_s21 + $0x50] sm:$0xff] %v782_v54  ;;  %v783_v62 = vadd.f32 %v1047_v60, %v1361_v19  ;;  %v574_v0 = vpop.f32.mrb[11].mxu0 }
 0x102   : > { %830 = vst [vmem:[%s1367_s21 + $0xd0] sm:$0xff] %v798_v55  ;;  %v799_v63 = vadd.f32 %v1063_v61, %v1361_v19  ;;  %v638_v1 = vpop.f32.mrb[11].mxu1  ;;  %812 = vst [vmem:[%s1367_s21 + $0x40] sm:$0xff] %v780_v58  ;;  %v781_v2 = vadd.f32 %v1361_v19, %v574_v0 }
 0x103   : > { %828 = vst [vmem:[%s1367_s21 + $0xc0] sm:$0xff] %v796_v59  ;;  %v797_v3 = vadd.f32 %v1361_v19, %v638_v1  ;;  %815 = vst [vmem:[%s1367_s21 + $0x58] sm:$0xff] %v783_v62 }
 0x104   : > { %831 = vst [vmem:[%s1367_s21 + $0xd8] sm:$0xff] %v799_v63  ;;  %813 = vst [vmem:[%s1367_s21 + $0x48] sm:$0xff] %v781_v2 }
 0x105   : > { %829 = vst [vmem:[%s1367_s21 + $0xc8] sm:$0xff] %v797_v3 }
 0x106   : > { %v1050_v4 = vpop.f32.mrb[12].mxu0 }
 0x107   : > { %v1066_v5 = vpop.f32.mrb[12].mxu1  ;;  %v786_v6 = vadd.f32 %v1050_v4, %v1361_v19  ;;  %v587_v8 = vpop.f32.mrb[13].mxu0 }
 0x108   : > { %v802_v7 = vadd.f32 %v1066_v5, %v1361_v19  ;;  %v651_v9 = vpop.f32.mrb[13].mxu1  ;;  %v784_v10 = vadd.f32 %v1361_v19, %v587_v8  ;;  %v1051_v12 = vpop.f32.mrb[14].mxu0 }
 0x109   : > { %v800_v11 = vadd.f32 %v1361_v19, %v651_v9  ;;  %v1067_v13 = vpop.f32.mrb[14].mxu1  ;;  %818 = vst [vmem:[%s1367_s21 + $0x70] sm:$0xff] %v786_v6  ;;  %v787_v14 = vadd.f32 %v1051_v12, %v1361_v19  ;;  %v590_v16 = vpop.f32.mrb[15].mxu0 }
 0x10a   : > { %834 = vst [vmem:[%s1367_s21 + $0xf0] sm:$0xff] %v802_v7  ;;  %v803_v15 = vadd.f32 %v1067_v13, %v1361_v19  ;;  %v654_v17 = vpop.f32.mrb[15].mxu1  ;;  %816 = vst [vmem:[%s1367_s21 + $0x60] sm:$0xff] %v784_v10  ;;  %v785_v18 = vadd.f32 %v1361_v19, %v590_v16 }
 0x10b   : > { %832 = vst [vmem:[%s1367_s21 + $0xe0] sm:$0xff] %v800_v11  ;;  %v801_v20 = vadd.f32 %v1361_v19, %v654_v17  ;;  %819 = vst [vmem:[%s1367_s21 + $0x78] sm:$0xff] %v787_v14 }
 0x10c   : > { %835 = vst [vmem:[%s1367_s21 + $0xf8] sm:$0xff] %v803_v15  ;;  %817 = vst [vmem:[%s1367_s21 + $0x68] sm:$0xff] %v785_v18 }
 0x10d   : > { %833 = vst [vmem:[%s1367_s21 + $0xe8] sm:$0xff] %v801_v20 }
 0x10e   : > { %1163 = shalt.err (!%p1160_p5)
}
 0x10f   : > { %s1164_s7 = scalar_lea.hbm %s1426_s28, 4096  ;;  %s1168_s10 = scalar_lea.hbm %s1489_s3, 8192 }
 0x110   : > { %p1165_p6 = scmp.ne.s32.totalorder %s1426_s28, %s1164_s7  ;;  %p1169_p10 = scmp.lt.u32.totalorder %s1426_s28, %s1489_s3 }
 0x111   : > { %p1170_p11 = scmp.lt.u32.totalorder %s1168_s10, %s1164_s7  ;;  %p1172_p13 = scmp.lt.u32.totalorder %s1164_s7, %s1426_s28 }
 0x112   : > { %p1166_p7 = pnand %p1165_p6, %p1293_p4 }
 0x113   : > { %p1171_p12 = por %p1170_p11, %p1169_p10 }
 0x114   : > { %p1167_p9 = pneg %p1166_p7 }
 0x115   : > { %p1173_p0 = por %p1172_p13, %p1171_p12 }
 0x117   : > { %p1174_p1 = pnand %p1173_p0, %p1167_p9 }
 0x119   : > { %1177 = shalt.err (!%p1174_p1)
}
 0x11a   : > { %s1231_s19 = smov 128   ;;  %s1232_s21 = smov 8  }
 0x11b   : > { %1074 = dma.vmem_to_hbm [thread:$0]  (%p1293_p4), %s1428_s26, 4096, %s1426_s28, %s1440_s29, %s1231_s19, %s1231_s19, %s1232_s21  }
 0x11c PF: > { %p1080_p2 = scmp.ge.s32.totalorder %s1228_s17, 2  ;;  %s866_s23 = sand.u32 1, %s1208_s12  }
 0x11d   : > { %s867_s15 = scalar_lea.sflag [#allocation4], %s866_s23 }
 0x11e   : > { %p1077_p3 = pnand %p1080_p2, %p1300_p8 }
 0x120   : > { %1203 = dma.done.wait (!%p1077_p3), %s867_s15, 4096  }
 0x121   : > { %1205 = vsyncadd (!%p1077_p3), %s867_s15, 4294963200  ;;  %s16_s17 = sadd.s32 1, %s1228_s17   ;;  %s1492_s12 = smov %s1212_s13 }
 0x122   : > { %p13_p5 = scmp.ge.s32.totalorder %s16_s17, 4   ;;  %s1493_s13 = smov %s1216_s14 }
 0x123   : > { %s1494_s14 = smov %s1306_s25  ;;  %s1495_s15 = smov %s1224_s16 }
 0x124   : > { %s1496_s16 = smov %s1498_s20  ;;  %15 = sbr.rel (!%p13_p5) target bundleno = 4 (0x4), region = 81 }
 0x12b   :  { %872 = vsyncpa [#allocation4], 1 }
 0x12c   :  { %874 = vsyncpa [#allocation4 + $0x1], 1 }

</bundles_post_ra>
